<compile_context>
chip_gen: v7x
topology: tpu7x:2x2x1
jax: 0.10.0
libtpu: 0.0.40
codegen_flags: <defaults>
</compile_context>

<pallas_src>
import functools

import jax
import jax.numpy as jnp
from jax import lax
from jax.experimental import pallas as pl
from jax.experimental.pallas import tpu as pltpu


# ---------------------------------------------------------------------------
# Kernels
# ---------------------------------------------------------------------------

def _mlp_kernel_resident(x_ref, w_ref, o_ref, *, unroll):
    """Whole bf16 weight stack resident in VMEM; layers in an in-kernel loop.

    x_ref: (tm, N) f32, w_ref: (L, N, N) bf16 pre-transposed to (in, out),
    o_ref: (tm, N) f32.
    """
    num_layers = w_ref.shape[0]
    acc0 = x_ref[...].astype(jnp.bfloat16)  # carry activation in bf16

    def layer(l, acc):
        # Plain row-major matmul: acc (tm, in) @ w (in, out) -> f32 accumulate.
        h = jnp.dot(acc, w_ref[l], preferred_element_type=jnp.float32)
        return jnp.maximum(h, 0.0).astype(jnp.bfloat16)

    acc = lax.fori_loop(0, num_layers, layer, acc0, unroll=unroll)
    o_ref[...] = acc.astype(o_ref.dtype)


def _mlp_kernel_streamed(x_ref, w_ref, o_ref, acc_ref):
    """Weights streamed one layer per grid step (BlockSpec double-buffers).

    grid = (batch_tiles, layers); layer is the inner "arbitrary" axis.
    x_ref: (tm, N) f32, w_ref: (1, N, N) bf16 (in, out), o_ref: (tm, N) f32,
    acc_ref: (tm, N) bf16 VMEM scratch carried across the layer axis.
    """
    l = pl.program_id(1)

    @pl.when(l == 0)
    def _():
        acc_ref[...] = x_ref[...].astype(acc_ref.dtype)

    h = jnp.dot(acc_ref[...], w_ref[0], preferred_element_type=jnp.float32)
    acc_ref[...] = jnp.maximum(h, 0.0).astype(acc_ref.dtype)

    @pl.when(l == pl.num_programs(1) - 1)
    def _():
        o_ref[...] = acc_ref[...].astype(o_ref.dtype)


# ---------------------------------------------------------------------------
# Wrapper
# ---------------------------------------------------------------------------

def _pick_batch_tile(batch):
    for tm in (256, 128, 64, 32, 16, 8):
        if batch % tm == 0:
            return tm
    return batch  # full-extent block is always legal


def mlp_forward(x, weights, *, streamed=None):
    """Forward pass of the bias-free MLP.

    x: (B, N) float32.
    weights: (L, N, N) float32/bfloat16 in PyTorch (out, in) layout.
    streamed: None -> auto (stream weights per layer when the stack is big).
    """
    B, N = x.shape
    L = weights.shape[0]

    # One-time wrapper-side prep: bf16 cast + transpose to (L, in, out) so the
    # kernel does acc @ w with no per-layer transpose (amortized across all
    # batch tiles since weights are resident / streamed from this array).
    w_t = jnp.swapaxes(weights.astype(jnp.bfloat16), 1, 2)
    # TODO(synk): int8 (v5e/v6e) or fp8-e4m3 (v7x) weight quantization with a
    # per-output-channel scale would halve weight HBM bytes on the
    # weight-bandwidth-bound path; kept bf16 here for numerical simplicity.

    weight_bytes = L * N * N * 2
    if streamed is None:
        streamed = weight_bytes > (4 << 20)

    tm = _pick_batch_tile(B)
    headroom = 2 << 20

    if not streamed:
        unroll = True if L <= 8 else 2  # cap unroll to bound vreg live ranges
        vmem_bytes = int(
            2 * weight_bytes        # bf16 weight stack (pipeline buffers)
            + 2 * tm * N * 4        # x tiles (f32, double-buffered)
            + 2 * tm * N * 4        # out tiles (f32, double-buffered)
            + headroom
        )
        return pl.pallas_call(
            functools.partial(_mlp_kernel_resident, unroll=unroll),
            out_shape=jax.ShapeDtypeStruct((B, N), jnp.float32),
            grid=(B // tm,),
            in_specs=[
                pl.BlockSpec((tm, N), lambda i: (i, 0)),
                pl.BlockSpec((L, N, N), lambda i: (0, 0, 0)),
            ],
            out_specs=pl.BlockSpec((tm, N), lambda i: (i, 0)),
            compiler_params=pltpu.CompilerParams(
                dimension_semantics=("parallel",),
                vmem_limit_bytes=vmem_bytes,
            ),
        )(x, w_t)

    vmem_bytes = int(
        2 * N * N * 2               # one layer's bf16 weights, double-buffered
        + 2 * tm * N * 4            # x tiles
        + 2 * tm * N * 4            # out tiles
        + tm * N * 2                # bf16 activation scratch
        + headroom
    )
    return pl.pallas_call(
        _mlp_kernel_streamed,
        out_shape=jax.ShapeDtypeStruct((B, N), jnp.float32),
        grid=(B // tm, L),
        in_specs=[
            pl.BlockSpec((tm, N), lambda i, l: (i, 0)),
            pl.BlockSpec((1, N, N), lambda i, l: (l, 0, 0)),
        ],
        out_specs=pl.BlockSpec((tm, N), lambda i, l: (i, 0)),
        scratch_shapes=[pltpu.VMEM((tm, N), jnp.bfloat16)],
        compiler_params=pltpu.CompilerParams(
            dimension_semantics=("parallel", "arbitrary"),
            vmem_limit_bytes=vmem_bytes,
        ),
    )(x, w_t)


# ---------------------------------------------------------------------------
# Init + reference
# ---------------------------------------------------------------------------

def make_params(key, neural_num, layers):
    """Kaiming-normal init (fan_in, gain=sqrt(2)), matching
    nn.init.kaiming_normal_ defaults on an (out, in) weight."""
    std = (2.0 / neural_num) ** 0.5
    return std * jax.random.normal(
        key, (layers, neural_num, neural_num), dtype=jnp.float32
    )


def mlp_reference(x, weights):
    """Pure-JAX reference using the identical bf16-operand / bf16-carry /
    f32-accumulate recipe as the kernels."""
    w_t = jnp.swapaxes(weights.astype(jnp.bfloat16), 1, 2)
    acc = x.astype(jnp.bfloat16)
    for l in range(weights.shape[0]):
        h = jnp.dot(acc, w_t[l], preferred_element_type=jnp.float32)
        acc = jnp.maximum(h, 0.0).astype(jnp.bfloat16)
    return acc.astype(jnp.float32)


if __name__ == "__main__":
    neural_num = 128   # feature width (lane-aligned)
    layers = 4
    batch = 8          # small demo batch; real workloads use batch tiles of 128/256

    key = jax.random.PRNGKey(0)
    kx, kw = jax.random.split(key)

    x = jax.random.normal(kx, (batch, neural_num), dtype=jnp.float32)
    weights = make_params(kw, neural_num, layers)

    ref = mlp_reference(x, weights)

    # Exercise both structural paths (resident weights; layer-streamed weights).
    out_resident = jax.block_until_ready(mlp_forward(x, weights, streamed=False))
    out_streamed = jax.block_until_ready(mlp_forward(x, weights, streamed=True))

    assert out_resident.shape == (batch, neural_num)
    assert out_streamed.shape == (batch, neural_num)
    assert jnp.allclose(out_resident, ref, rtol=1e-2, atol=1e-2)
    assert jnp.allclose(out_streamed, ref, rtol=1e-2, atol=1e-2)
    assert jnp.allclose(out_resident, out_streamed, rtol=1e-2, atol=1e-2)

    # TODO(synk): per-layer std printing / NaN early-break in the PyTorch
    # forward is debug instrumentation (data-dependent control flow), not part
    # of the numeric result, and is not reproduced in the kernel.
    print("KERNEL_OK")
</pallas_src>

<mosaic_0001>
module attributes {stable_mosaic.version = 11 : i64} {
  func.func @_mlp_kernel_resident(%arg0: i32, %arg1: memref<8x128xf32, #tpu.memory_space<vmem>>, %arg2: memref<4x128x128xbf16, #tpu.memory_space<vmem>>, %arg3: memref<8x128xf32, #tpu.memory_space<vmem>>) attributes {dimension_semantics = [#tpu.dimension_semantics<parallel>], iteration_bounds = array<i64: 1>, scalar_prefetch = 0 : i64, scratch_operands = 0 : i64, tpu.core_type = #tpu.core_type<tc>, window_params = [{transform_indices = @transform_0, window_bounds = array<i64: 8, 128>}, {pipeline_mode = #tpu.pipeline_mode<synchronous>, transform_indices = @transform_1, window_bounds = array<i64: 4, 128, 128>}, {transform_indices = @transform_2, window_bounds = array<i64: 8, 128>}]} {
    %c0 = arith.constant 0 : index
    %c0_0 = arith.constant 0 : index
    %0 = vector.load %arg1[%c0, %c0_0] : memref<8x128xf32, #tpu.memory_space<vmem>>, vector<8x128xf32>
    %1 = arith.truncf %0 : vector<8x128xf32> to vector<8x128xbf16>
    %c0_i32 = arith.constant 0 : i32
    %2 = arith.index_cast %c0_i32 : i32 to index
    %c0_1 = arith.constant 0 : index
    %c0_2 = arith.constant 0 : index
    %3 = vector.load %arg2[%2, %c0_1, %c0_2] : memref<4x128x128xbf16, #tpu.memory_space<vmem>>, vector<1x128x128xbf16>
    %4 = vector.shape_cast %3 : vector<1x128x128xbf16> to vector<128x128xbf16>
    %cst = arith.constant dense<0.000000e+00> : vector<8x128xf32>
    %5 = tpu.matmul %1, %4, %cst {dimension_numbers = #tpu.dot_dimension_numbers<[1], [0], [0], [1], [0, 0, 1, 1], [], []>} : vector<8x128xbf16>, vector<128x128xbf16>, vector<8x128xf32> -> vector<8x128xf32>
    %cst_3 = arith.constant 0.000000e+00 : f32
    %6 = vector.broadcast %cst_3 : f32 to vector<8x128xf32>
    %7 = arith.maximumf %5, %6 : vector<8x128xf32>
    %8 = arith.truncf %7 : vector<8x128xf32> to vector<8x128xbf16>
    %c1_i32 = arith.constant 1 : i32
    %9 = arith.index_cast %c1_i32 : i32 to index
    %c0_4 = arith.constant 0 : index
    %c0_5 = arith.constant 0 : index
    %10 = vector.load %arg2[%9, %c0_4, %c0_5] : memref<4x128x128xbf16, #tpu.memory_space<vmem>>, vector<1x128x128xbf16>
    %11 = vector.shape_cast %10 : vector<1x128x128xbf16> to vector<128x128xbf16>
    %cst_6 = arith.constant dense<0.000000e+00> : vector<8x128xf32>
    %12 = tpu.matmul %8, %11, %cst_6 {dimension_numbers = #tpu.dot_dimension_numbers<[1], [0], [0], [1], [0, 0, 1, 1], [], []>} : vector<8x128xbf16>, vector<128x128xbf16>, vector<8x128xf32> -> vector<8x128xf32>
    %cst_7 = arith.constant 0.000000e+00 : f32
    %13 = vector.broadcast %cst_7 : f32 to vector<8x128xf32>
    %14 = arith.maximumf %12, %13 : vector<8x128xf32>
    %15 = arith.truncf %14 : vector<8x128xf32> to vector<8x128xbf16>
    %c2_i32 = arith.constant 2 : i32
    %16 = arith.index_cast %c2_i32 : i32 to index
    %c0_8 = arith.constant 0 : index
    %c0_9 = arith.constant 0 : index
    %17 = vector.load %arg2[%16, %c0_8, %c0_9] : memref<4x128x128xbf16, #tpu.memory_space<vmem>>, vector<1x128x128xbf16>
    %18 = vector.shape_cast %17 : vector<1x128x128xbf16> to vector<128x128xbf16>
    %cst_10 = arith.constant dense<0.000000e+00> : vector<8x128xf32>
    %19 = tpu.matmul %15, %18, %cst_10 {dimension_numbers = #tpu.dot_dimension_numbers<[1], [0], [0], [1], [0, 0, 1, 1], [], []>} : vector<8x128xbf16>, vector<128x128xbf16>, vector<8x128xf32> -> vector<8x128xf32>
    %cst_11 = arith.constant 0.000000e+00 : f32
    %20 = vector.broadcast %cst_11 : f32 to vector<8x128xf32>
    %21 = arith.maximumf %19, %20 : vector<8x128xf32>
    %22 = arith.truncf %21 : vector<8x128xf32> to vector<8x128xbf16>
    %c3_i32 = arith.constant 3 : i32
    %23 = arith.index_cast %c3_i32 : i32 to index
    %c0_12 = arith.constant 0 : index
    %c0_13 = arith.constant 0 : index
    %24 = vector.load %arg2[%23, %c0_12, %c0_13] : memref<4x128x128xbf16, #tpu.memory_space<vmem>>, vector<1x128x128xbf16>
    %25 = vector.shape_cast %24 : vector<1x128x128xbf16> to vector<128x128xbf16>
    %cst_14 = arith.constant dense<0.000000e+00> : vector<8x128xf32>
    %26 = tpu.matmul %22, %25, %cst_14 {dimension_numbers = #tpu.dot_dimension_numbers<[1], [0], [0], [1], [0, 0, 1, 1], [], []>} : vector<8x128xbf16>, vector<128x128xbf16>, vector<8x128xf32> -> vector<8x128xf32>
    %cst_15 = arith.constant 0.000000e+00 : f32
    %27 = vector.broadcast %cst_15 : f32 to vector<8x128xf32>
    %28 = arith.maximumf %26, %27 : vector<8x128xf32>
    %29 = arith.truncf %28 : vector<8x128xf32> to vector<8x128xbf16>
    %c4_i32 = arith.constant 4 : i32
    %30 = arith.extf %29 : vector<8x128xbf16> to vector<8x128xf32>
    %c0_16 = arith.constant 0 : index
    %c0_17 = arith.constant 0 : index
    %31 = vector.load %arg3[%c0_16, %c0_17] : memref<8x128xf32, #tpu.memory_space<vmem>>, vector<8x128xf32>
    tpu.vector_store %arg3[%c0_16, %c0_17], %30 {strides = array<i32>} : memref<8x128xf32, #tpu.memory_space<vmem>>, vector<8x128xf32>,
    return
  }
  func.func @transform_0(%arg0: i32) -> (i32, i32) {
    %c0_i32 = arith.constant 0 : i32
    %c0_i32_0 = arith.constant 0 : i32
    return %arg0, %c0_i32 : i32, i32
  }
  func.func @transform_1(%arg0: i32) -> (i32, i32, i32) {
    %c0_i32 = arith.constant 0 : i32
    %c0_i32_0 = arith.constant 0 : i32
    %c0_i32_1 = arith.constant 0 : i32
    %c0_i32_2 = arith.constant 0 : i32
    return %c0_i32, %c0_i32_0, %c0_i32_1 : i32, i32, i32
  }
  func.func @transform_2(%arg0: i32) -> (i32, i32) {
    %c0_i32 = arith.constant 0 : i32
    %c0_i32_0 = arith.constant 0 : i32
    return %arg0, %c0_i32 : i32, i32
  }
}

</mosaic_0001>

<bundles_post_ra>
// kernel: tpu_custom_call.1
= control target key start
LH: loop header
LB: loop body
LE: loop exit
PB: predicated region body
PF: predicated region fallthrough
CT: control target
= control target key end

     0   :  { %7 = vsyncpa [#allocation3], 0  ;;  %s850_s0 = inlined_call_operand.hbm [shape: f32[8,128], index: 0, kind: input, shape index: {}]   ;;  %s851_s1 = inlined_call_operand.hbm [shape: bf16[4,128,128], index: 1, kind: input, shape index: {}]   ;;  %s852_s2 = inlined_call_operand.hbm [shape: f32[8,128], index: 2, kind: output, shape index: {}]  }
   0x1   :  { %8 = vsyncpa [#allocation6], 0 }
   0x2   :  { %9 = vsyncpa [#allocation4], 0  ;;  %s745_s9 = smov [#allocation2]   ;;  %s746_s11 = smov [#allocation5]  }
   0x3   :  { %s16_s10 = sshll.u32 %s745_s9, 4  ;;  %s25_s12 = sshll.u32 %s746_s11, 4  ;;  %s17_s10 = int_to_ptr.vmem [resolvable:$true] %s16_s10  ;;  %s767_s12 = int_to_ptr.vmem [resolvable:$true] %s25_s12 }
   0x4   :  { %s673_s15 = scalar_lea.hbm %s850_s0, 128 }
   0x5   :  { %p674_p0 = scmp.ne.s32.totalorder %s850_s0, %s673_s15  ;;  %p677_p1 = scmp.lt.u32.totalorder %s673_s15, %s850_s0 }
   0x7   :  { %p679_p2 = pnand %p677_p1, %p674_p0 }
   0x9   :  { %682 = shalt.err (!%p679_p2)
}
   0xa   :  { %s683_s20 = scalar_lea.vmem %s17_s10, 128  ;;  %p688_p4 = scmp.lt.s32.totalorder %s17_s10, %s17_s10 }
   0xb   :  { %p684_p3 = scmp.ne.s32.totalorder %s17_s10, %s683_s20  ;;  %p689_p5 = scmp.lt.s32.totalorder %s683_s20, %s683_s20 }
   0xd   :  { %p690_p6 = por %p689_p5, %p688_p4 }
   0xf   :  { %p691_p7 = pnand %p690_p6, %p684_p3 }
  0x11   :  { %694 = shalt.err (!%p691_p7)
}
  0x12   :  { %19 = dma.hbm_to_vmem [thread:$0]  %s850_s0, 128, %s17_s10, [#allocation3]  }
  0x13   :  { %s695_s25 = scalar_lea.hbm %s851_s1, 4096 }
  0x14   :  { %p696_p8 = scmp.ne.s32.totalorder %s851_s1, %s695_s25  ;;  %p699_p9 = scmp.lt.u32.totalorder %s695_s25, %s851_s1 }
  0x16   :  { %p701_p10 = pnand %p699_p9, %p696_p8 }
  0x18   :  { %704 = shalt.err (!%p701_p10)
}
  0x19   :  { %s705_s30 = scalar_lea.vmem %s767_s12, 4096  ;;  %p710_p12 = scmp.lt.s32.totalorder %s767_s12, %s767_s12 }
  0x1a   :  { %p706_p11 = scmp.ne.s32.totalorder %s767_s12, %s705_s30  ;;  %p711_p13 = scmp.lt.s32.totalorder %s705_s30, %s705_s30 }
  0x1c   :  { %p712_p0 = por %p711_p13, %p710_p12 }
  0x1e   :  { %p713_p1 = pnand %p712_p0, %p706_p11 }
  0x20   :  { %716 = shalt.err (!%p713_p1)
}
  0x21   :  { %s747_s0 = smov 64   ;;  %s748_s3 = smov 4  }
  0x22   :  { %31 = dma.hbm_to_vmem [thread:$0]  %s851_s1, 4096, %s767_s12, [#allocation6], %s747_s0, %s747_s0, %s748_s3  }
  0x23   :  { %739 = dma.done.wait [#allocation3], 128  }
  0x24   :  { %740 = vsyncadd [#allocation3], 4294967168 }
  0x25   :  { %741 = dma.done.wait [#allocation6], 4096  }
  0x26   :  { %742 = vsyncadd [#allocation6], 4294963200  ;;  %v749_v0 = vmov 0.0   ;;  %vm750_vm0 = vmmov 0   ;;  %v641_v1 = vld [vmem:[#allocation5] sm:$0xff]   ;;  %v642_v2 = vld [vmem:[#allocation5 + $0x8] sm:$0xff]  }
  0x27   :  { %554 = vmatprep.subr.bf16.mxu0 %v749_v0  ;;  %570 = vmatprep.mubr.msk.bf16.mxu0 %vm750_vm0, %v749_v0  ;;  %v643_v3 = vld [vmem:[#allocation5 + $0x10] sm:$0xff]   ;;  %v649_v4 = vld [vmem:[#allocation5 + $0x40] sm:$0xff]   ;;  %v644_v5 = vld [vmem:[#allocation5 + $0x18] sm:$0xff]   ;;  %s751_s1 = smov [#allocation7]  }
  0x28   :  { %574 = vmatprep.subr.bf16.mxu1 %v749_v0  ;;  %590 = vmatprep.mubr.msk.bf16.mxu1 %vm750_vm0, %v749_v0  ;;  %v650_v6 = vld [vmem:[#allocation5 + $0x48] sm:$0xff]   ;;  %v645_v7 = vld [vmem:[#allocation5 + $0x20] sm:$0xff]   ;;  %v651_v8 = vld [vmem:[#allocation5 + $0x50] sm:$0xff]   ;;  %s476_s6 = sshll.u32 %s751_s1, 4  ;;  %s477_s6 = int_to_ptr.vmem [resolvable:$true] %s476_s6 }
  0x29   :  { %555 = vmatpush3.bf16.msra.mxu0 %v641_v1  ;;  %575 = vmatpush3.bf16.msra.mxu1 %v649_v4  ;;  %v646_v9 = vld [vmem:[#allocation5 + $0x28] sm:$0xff]   ;;  %v652_v10 = vld [vmem:[#allocation5 + $0x58] sm:$0xff]   ;;  %v647_v11 = vld [vmem:[#allocation5 + $0x30] sm:$0xff]   ;;  %s717_s7 = scalar_lea.vmem %s477_s6, 128  ;;  %p722_p3 = scmp.lt.s32.totalorder %s477_s6, %s477_s6 }
  0x2a   :  { %556 = vmatprep.subr.bf16.mxu0 %v749_v0  ;;  %576 = vmatprep.subr.bf16.mxu1 %v749_v0  ;;  %v653_v12 = vld [vmem:[#allocation5 + $0x60] sm:$0xff]   ;;  %v648_v13 = vld [vmem:[#allocation5 + $0x38] sm:$0xff]   ;;  %v654_v15 = vld [vmem:[#allocation5 + $0x68] sm:$0xff]   ;;  %p718_p2 = scmp.ne.s32.totalorder %s477_s6, %s717_s7  ;;  %p723_p4 = scmp.lt.s32.totalorder %s717_s7, %s717_s7 }
  0x2b   :  { %v39_v14 = vld [vmem:[#allocation2] sm:$0xff]  ;;  %v655_v17 = vld [vmem:[#allocation5 + $0x70] sm:$0xff]   ;;  %v657_v19 = vld [vmem:[#allocation5 + $0x80] sm:$0xff]  }
  0x2c   :  { %v40_v16 = vpack.c.bf16 %v39_v14, %v39_v14  ;;  %v656_v18 = vld [vmem:[#allocation5 + $0x78] sm:$0xff]   ;;  %v658_v20 = vld [vmem:[#allocation5 + $0x88] sm:$0xff]   ;;  %v659_v21 = vld [vmem:[#allocation5 + $0x90] sm:$0xff]   ;;  %p724_p5 = por %p723_p4, %p722_p3 }
  0x2d   :  { %557 = vmatpush3.bf16.msra.mxu0 %v642_v2  ;;  %577 = vmatpush3.bf16.msra.mxu1 %v650_v6  ;;  %v660_v22 = vld [vmem:[#allocation5 + $0x98] sm:$0xff]   ;;  %v661_v23 = vld [vmem:[#allocation5 + $0xa0] sm:$0xff]   ;;  %v662_v24 = vld [vmem:[#allocation5 + $0xa8] sm:$0xff]  }
  0x2e   :  { %558 = vmatprep.subr.bf16.mxu0 %v749_v0  ;;  %578 = vmatprep.subr.bf16.mxu1 %v749_v0  ;;  %v663_v25 = vld [vmem:[#allocation5 + $0xb0] sm:$0xff]   ;;  %v664_v32 = vld [vmem:[#allocation5 + $0xb8] sm:$0xff]   ;;  %v665_v33 = vld [vmem:[#allocation5 + $0xc0] sm:$0xff]   ;;  %p725_p6 = pnand %p724_p5, %p718_p2 }
  0x2f   :  { %v666_v34 = vld [vmem:[#allocation5 + $0xc8] sm:$0xff]   ;;  %v667_v35 = vld [vmem:[#allocation5 + $0xd0] sm:$0xff]   ;;  %v668_v36 = vld [vmem:[#allocation5 + $0xd8] sm:$0xff]  }
  0x30   :  { %v669_v37 = vld [vmem:[#allocation5 + $0xe0] sm:$0xff]   ;;  %v670_v38 = vld [vmem:[#allocation5 + $0xe8] sm:$0xff]   ;;  %v671_v39 = vld [vmem:[#allocation5 + $0xf0] sm:$0xff]  }
  0x31   :  { %559 = vmatpush3.bf16.msra.mxu0 %v643_v3  ;;  %579 = vmatpush3.bf16.msra.mxu1 %v651_v8  ;;  %v672_v46 = vld [vmem:[#allocation5 + $0xf8] sm:$0xff]  }
  0x32   :  { %560 = vmatprep.subr.bf16.mxu0 %v749_v0  ;;  %580 = vmatprep.subr.bf16.mxu1 %v749_v0 }
  0x35   :  { %561 = vmatpush3.bf16.msra.mxu0 %v644_v5  ;;  %581 = vmatpush3.bf16.msra.mxu1 %v652_v10 }
  0x36   :  { %562 = vmatprep.subr.bf16.mxu0 %v749_v0  ;;  %582 = vmatprep.subr.bf16.mxu1 %v749_v0 }
  0x39   :  { %563 = vmatpush3.bf16.msra.mxu0 %v645_v7  ;;  %583 = vmatpush3.bf16.msra.mxu1 %v653_v12 }
  0x3a   :  { %564 = vmatprep.subr.bf16.mxu0 %v749_v0  ;;  %584 = vmatprep.subr.bf16.mxu1 %v749_v0 }
  0x3d   :  { %565 = vmatpush3.bf16.msra.mxu0 %v646_v9  ;;  %585 = vmatpush3.bf16.msra.mxu1 %v654_v15 }
  0x3e   :  { %566 = vmatprep.subr.bf16.mxu0 %v749_v0  ;;  %586 = vmatprep.subr.bf16.mxu1 %v749_v0 }
  0x41   :  { %567 = vmatpush3.bf16.msra.mxu0 %v647_v11  ;;  %587 = vmatpush3.bf16.msra.mxu1 %v655_v17 }
  0x42   :  { %568 = vmatprep.subr.bf16.mxu0 %v749_v0  ;;  %588 = vmatprep.subr.bf16.mxu1 %v749_v0 }
  0x45   :  { %569 = vmatpush3.bf16.msra.mxu0 %v648_v13  ;;  %589 = vmatpush3.bf16.msra.mxu1 %v656_v18 }
  0x46   :  { %594 = vmatprep.subr.bf16.mxu0 %v749_v0  ;;  %614 = vmatprep.subr.bf16.mxu1 %v749_v0 }
  0x48   :  { %571 = vmatmul.mubr.bf16.vlgmr.msra.gmra.mrb[0].mxu0 %v40_v16 }
  0x49   :  { %610 = vmatprep.mubr.msk.bf16.mxu0 %vm750_vm0, %v749_v0  ;;  %595 = vmatpush3.bf16.msra.mxu0 %v657_v19 }
  0x4a   :  { %596 = vmatprep.subr.bf16.mxu0 %v749_v0 }
  0x4d   :  { %597 = vmatpush3.bf16.msra.mxu0 %v658_v20 }
  0x4e   :  { %598 = vmatprep.subr.bf16.mxu0 %v749_v0 }
  0x51   :  { %599 = vmatpush3.bf16.msra.mxu0 %v659_v21 }
  0x52   :  { %600 = vmatprep.subr.bf16.mxu0 %v749_v0 }
  0x55   :  { %601 = vmatpush3.bf16.msra.mxu0 %v660_v22 }
  0x56   :  { %602 = vmatprep.subr.bf16.mxu0 %v749_v0 }
  0x59   :  { %603 = vmatpush3.bf16.msra.mxu0 %v661_v23 }
  0x5a   :  { %604 = vmatprep.subr.bf16.mxu0 %v749_v0 }
  0x5d   :  { %605 = vmatpush3.bf16.msra.mxu0 %v662_v24 }
  0x5e   :  { %606 = vmatprep.subr.bf16.mxu0 %v749_v0 }
  0x61   :  { %607 = vmatpush3.bf16.msra.mxu0 %v663_v25 }
  0x62   :  { %608 = vmatprep.subr.bf16.mxu0 %v749_v0 }
  0x65   :  { %609 = vmatpush3.bf16.msra.mxu0 %v664_v32 }
 0x11b   :  { %v139_v26 = vpop.f32.mrb[0].mxu0 }
 0x11c   :  { %v145_v27 = vmax.f32 %v139_v26, 0.0  ;;  %v572_v28 = vpop.f32.mrb[1].mxu0 }
 0x11d   :  { %v142_v29 = vpop.f32.mrb[2].mxu0 }
 0x11e   :  { %v146_v30 = vpack.c.bf16 %v145_v27, %v145_v27  ;;  %v573_v31 = vpop.f32.mrb[3].mxu0 }
 0x120   :  { %591 = vmatmul.mubr.bf16.vlgmr.msra.gmra.mrb[0].mxu1 %v146_v30 }
 0x121   :  { %630 = vmatprep.mubr.msk.bf16.mxu1 %vm750_vm0, %v749_v0  ;;  %615 = vmatpush3.bf16.msra.mxu1 %v665_v33 }
 0x122   :  { %616 = vmatprep.subr.bf16.mxu1 %v749_v0 }
 0x125   :  { %617 = vmatpush3.bf16.msra.mxu1 %v666_v34 }
 0x126   :  { %618 = vmatprep.subr.bf16.mxu1 %v749_v0 }
 0x129   :  { %619 = vmatpush3.bf16.msra.mxu1 %v667_v35 }
 0x12a   :  { %620 = vmatprep.subr.bf16.mxu1 %v749_v0 }
 0x12d   :  { %621 = vmatpush3.bf16.msra.mxu1 %v668_v36 }
 0x12e   :  { %622 = vmatprep.subr.bf16.mxu1 %v749_v0 }
 0x131   :  { %623 = vmatpush3.bf16.msra.mxu1 %v669_v37 }
 0x132   :  { %624 = vmatprep.subr.bf16.mxu1 %v749_v0 }
 0x135   :  { %625 = vmatpush3.bf16.msra.mxu1 %v670_v38 }
 0x136   :  { %626 = vmatprep.subr.bf16.mxu1 %v749_v0 }
 0x139   :  { %627 = vmatpush3.bf16.msra.mxu1 %v671_v39 }
 0x13a   :  { %628 = vmatprep.subr.bf16.mxu1 %v749_v0 }
 0x13d   :  { %629 = vmatpush3.bf16.msra.mxu1 %v672_v46 }
 0x1f3   :  { %v246_v40 = vpop.f32.mrb[0].mxu1 }
 0x1f4   :  { %v252_v41 = vmax.f32 %v246_v40, 0.0  ;;  %v592_v42 = vpop.f32.mrb[1].mxu1 }
 0x1f5   :  { %v249_v43 = vpop.f32.mrb[2].mxu1 }
 0x1f6   :  { %v253_v44 = vpack.c.bf16 %v252_v41, %v252_v41  ;;  %v593_v45 = vpop.f32.mrb[3].mxu1 }
 0x1f8   :  { %611 = vmatmul.mubr.bf16.vlgmr.msra.gmra.mrb[4].mxu0 %v253_v44 }
 0x2cb   :  { %v353_v47 = vpop.f32.mrb[4].mxu0 }
 0x2cc   :  { %v359_v48 = vmax.f32 %v353_v47, 0.0  ;;  %v612_v49 = vpop.f32.mrb[5].mxu0 }
 0x2cd   :  { %v356_v50 = vpop.f32.mrb[6].mxu0 }
 0x2ce   :  { %v360_v51 = vpack.c.bf16 %v359_v48, %v359_v48  ;;  %v613_v52 = vpop.f32.mrb[7].mxu0 }
 0x2d0   :  { %631 = vmatmul.mubr.bf16.vlgmr.msra.gmra.mrb[4].mxu1 %v360_v51 }
 0x3a3   :  { %v460_v53 = vpop.f32.mrb[4].mxu1 }
 0x3a4   :  { %v466_v54 = vmax.f32 %v460_v53, 0.0  ;;  %v632_v55 = vpop.f32.mrb[5].mxu1 }
 0x3a5   :  { %v463_v56 = vpop.f32.mrb[6].mxu1 }
 0x3a6   :  { %v467_v57 = vpack.c.bf16 %v466_v54, %v466_v54  ;;  %v633_v58 = vpop.f32.mrb[7].mxu1 }
 0x3a8   :  { %v468_v59 = vunpack.c.l.bf16 %v467_v57 }
 0x3aa   :  { %469 = vst [vmem:[#allocation7] sm:$0xff] %v468_v59 }
 0x3ab   :  { %728 = shalt.err (!%p725_p6)
}
 0x3ac   :  { %s729_s10 = scalar_lea.hbm %s852_s2, 128 }
 0x3ad   :  { %p730_p7 = scmp.ne.s32.totalorder %s852_s2, %s729_s10  ;;  %p733_p8 = scmp.lt.u32.totalorder %s729_s10, %s852_s2 }
 0x3af   :  { %p735_p9 = pnand %p733_p8, %p730_p7 }
 0x3b1   :  { %738 = shalt.err (!%p735_p9)
}
 0x3b2   :  { %479 = dma.vmem_to_hbm [thread:$0]  %s477_s6, 128, %s852_s2, [#allocation4]  }
 0x3b3   :  { %743 = dma.done.wait [#allocation4], 128  }
 0x3b4   :  { %744 = vsyncadd [#allocation4], 4294967168 }
 0x3b5   :  { %483 = vsyncpa [#allocation3], 1 }
 0x3b6   :  { %484 = vsyncpa [#allocation6], 1 }
 0x3b7   :  { %485 = vsyncpa [#allocation4], 1 }

</bundles_post_ra>
